<compile_context>
chip_gen: v7x
topology: tpu7x:2x2x1
jax: 0.10.0
libtpu: 0.0.40
codegen_flags: <defaults>
</compile_context>

<pallas_src>
import functools

import jax
import jax.numpy as jnp
from jax import lax
from jax.experimental import pallas as pl
from jax.experimental.pallas import tpu as pltpu

BN_EPS = 1e-5


def _round_up(x, m):
    return (x + m - 1) // m * m


def _mlp_kernel(x_ref, w1_ref, gamma_ref, beta_ref, w2_ref, b2_ref, o_ref,
                acc_ref, *, n_rows):
    """Grid = (d_out tiles [parallel], H tiles [arbitrary reduction])."""
    k = pl.program_id(1)

    @pl.when(k == 0)
    def _():
        acc_ref[...] = jnp.zeros_like(acc_ref)

    # ---- Linear 1 slab: bf16 operands, f32 accumulation on the MXU. ----
    # (b1 is omitted: train-mode BN mean subtraction cancels it exactly.)
    h = jnp.dot(x_ref[...], w1_ref[...], preferred_element_type=jnp.float32)

    # ---- BatchNorm1d (training-mode batch stats), folded into scale/shift ---
    # Stats are per-feature, so they are exact per H-tile.  Zero-padded batch
    # rows contribute 0 to the sums, so divide by the true row count.
    inv_n = jnp.float32(1.0 / n_rows)
    mean = jnp.sum(h, axis=0, keepdims=True) * inv_n
    var = jnp.maximum(
        jnp.sum(h * h, axis=0, keepdims=True) * inv_n - mean * mean, 0.0)
    scale = gamma_ref[...] * lax.rsqrt(var + BN_EPS)          # (1, TH), EUP
    shift = beta_ref[...] - mean * scale                      # (1, TH)

    # ---- BN affine + ReLU in a single pass over the (N, TH) slab ----
    a = jnp.maximum(h * scale + shift, 0.0)

    # ---- Linear 2 slab -> f32 accumulator (bf16 operands on the MXU) ----
    acc_ref[...] += jnp.dot(a.astype(w2_ref.dtype), w2_ref[...],
                            preferred_element_type=jnp.float32)

    @pl.when(k == pl.num_programs(1) - 1)
    def _():
        o_ref[...] = (acc_ref[...] + b2_ref[...]).astype(o_ref.dtype)


def mlp_forward(x, w1, b1, gamma, beta, w2, b2, *,
                th=None, tn=None, vmem_limit_bytes=32 * 1024 * 1024):
    """x: (N, D_in); w1: (D_in, H); w2: (H, D_out); b1/gamma/beta: (H,); b2: (D_out,)."""
    n, d_in = x.shape
    h_dim, d_out = w2.shape
    del b1  # exactly cancelled by train-mode BatchNorm mean subtraction

    # Tile sizes: H reduction tile and lane-dense D_out tile (multiples of 128).
    # NOTE: on v7x (64 MiB VMEM / 2 TCs) prefer smaller th; on v5e/v6e 512 is fine.
    th = th if th is not None else min(512, _round_up(h_dim, 128))
    tn = tn if tn is not None else min(512, _round_up(d_out, 128))

    n_pad = _round_up(max(n, 8), 8)
    h_pad = _round_up(h_dim, th)
    d_out_pad = _round_up(d_out, tn)

    f32, bf16 = jnp.float32, jnp.bfloat16

    # Zero-pad operands.  Padded hidden features get gamma = beta = 0 and zero
    # w2 rows, so they contribute exactly 0 to the output; padded batch rows /
    # output columns are sliced off at the end.
    xp = jnp.zeros((n_pad, d_in), bf16).at[:n, :].set(x.astype(bf16))
    w1p = jnp.zeros((d_in, h_pad), bf16).at[:, :h_dim].set(w1.astype(bf16))
    gp = jnp.zeros((1, h_pad), f32).at[:, :h_dim].set(
        gamma.reshape(1, -1).astype(f32))
    bp = jnp.zeros((1, h_pad), f32).at[:, :h_dim].set(
        beta.reshape(1, -1).astype(f32))
    w2p = jnp.zeros((h_pad, d_out_pad), bf16).at[:h_dim, :d_out].set(
        w2.astype(bf16))
    b2p = jnp.zeros((1, d_out_pad), f32).at[:, :d_out].set(
        b2.reshape(1, -1).astype(f32))

    grid = (d_out_pad // tn, h_pad // th)  # (parallel, arbitrary-reduction)

    flops = 2 * n * d_in * h_dim + 2 * n * h_dim * d_out
    bytes_accessed = int(xp.size * 2 + w1p.size * 2 + w2p.size * 2 +
                         (gp.size + bp.size + b2p.size) * 4 +
                         n_pad * d_out_pad * 4)
    cost = pl.CostEstimate(flops=flops, transcendentals=h_dim,
                           bytes_accessed=bytes_accessed)

    kernel = functools.partial(_mlp_kernel, n_rows=n)

    out = pl.pallas_call(
        kernel,
        out_shape=jax.ShapeDtypeStruct((n_pad, d_out_pad), f32),
        grid_spec=pltpu.PrefetchScalarGridSpec(
            num_scalar_prefetch=0,
            grid=grid,
            in_specs=[
                pl.BlockSpec((n_pad, d_in), lambda j, k: (0, 0)),   # x (resident)
                pl.BlockSpec((d_in, th), lambda j, k: (0, k)),      # w1 H-slab
                pl.BlockSpec((1, th), lambda j, k: (0, k)),         # gamma slab
                pl.BlockSpec((1, th), lambda j, k: (0, k)),         # beta slab
                pl.BlockSpec((th, tn), lambda j, k: (k, j)),        # w2 slab
                pl.BlockSpec((1, tn), lambda j, k: (0, j)),         # b2 tile
            ],
            out_specs=pl.BlockSpec((n_pad, tn), lambda j, k: (0, j)),
            scratch_shapes=[pltpu.VMEM((n_pad, tn), f32)],
        ),
        compiler_params=pltpu.CompilerParams(
            dimension_semantics=("parallel", "arbitrary"),
            vmem_limit_bytes=vmem_limit_bytes,
        ),
        cost_estimate=cost,
    )(xp, w1p, gp, bp, w2p, b2p)

    return out[:n, :d_out]


def mlp_reference(x, w1, b1, gamma, beta, w2, b2):
    """Pure-JAX reference mirroring the kernel's bf16-operand / f32-accumulate path."""
    xb, w1b, w2b = (a.astype(jnp.bfloat16) for a in (x, w1, w2))
    h = jnp.dot(xb, w1b, preferred_element_type=jnp.float32) + b1
    mean = jnp.mean(h, axis=0, keepdims=True)
    var = jnp.mean((h - mean) ** 2, axis=0, keepdims=True)
    h = (h - mean) / jnp.sqrt(var + BN_EPS) * gamma + beta
    a = jnp.maximum(h, 0.0)
    return jnp.dot(a.astype(jnp.bfloat16), w2b,
                   preferred_element_type=jnp.float32) + b2


if __name__ == "__main__":
    # Small shapes consistent with MLP(input_dim, hidden_dim, output_dim).
    N, INPUT_DIM, HIDDEN_DIM, OUTPUT_DIM = 8, 32, 32, 16

    key = jax.random.PRNGKey(0)
    kx, kw1, kb1, kg, kbta, kw2, kb2 = jax.random.split(key, 7)

    x = jax.random.normal(kx, (N, INPUT_DIM), dtype=jnp.float32)

    # Deterministic synthetic parameters (shapes match the nn.Module __init__;
    # weights stored transposed relative to PyTorch so the kernel does x @ W).
    w1 = jax.random.normal(kw1, (INPUT_DIM, HIDDEN_DIM), jnp.float32) * 0.1
    b1 = jax.random.normal(kb1, (HIDDEN_DIM,), jnp.float32) * 0.1
    gamma = 1.0 + 0.1 * jax.random.normal(kg, (HIDDEN_DIM,), jnp.float32)
    beta = 0.1 * jax.random.normal(kbta, (HIDDEN_DIM,), jnp.float32)
    w2 = jax.random.normal(kw2, (HIDDEN_DIM, OUTPUT_DIM), jnp.float32) * 0.1
    b2 = jax.random.normal(kb2, (OUTPUT_DIM,), jnp.float32) * 0.1

    out = mlp_forward(x, w1, b1, gamma, beta, w2, b2)
    out = jax.block_until_ready(out)

    ref = mlp_reference(x, w1, b1, gamma, beta, w2, b2)
    assert out.shape == (N, OUTPUT_DIM)
    assert jnp.allclose(out, ref, atol=1e-3, rtol=1e-3), "mismatch vs reference"

    print("KERNEL_OK")
</pallas_src>

<mosaic_0001>
module attributes {stable_mosaic.version = 11 : i64} {
  func.func @_mlp_kernel(%arg0: i32, %arg1: i32, %arg2: memref<8x32xbf16, #tpu.memory_space<vmem>>, %arg3: memref<32x128xbf16, #tpu.memory_space<vmem>>, %arg4: memref<1x128xf32, #tpu.memory_space<vmem>>, %arg5: memref<1x128xf32, #tpu.memory_space<vmem>>, %arg6: memref<128x128xbf16, #tpu.memory_space<vmem>>, %arg7: memref<1x128xf32, #tpu.memory_space<vmem>>, %arg8: memref<8x128xf32, #tpu.memory_space<vmem>>, %arg9: memref<8x128xf32, #tpu.memory_space<vmem>>) attributes {dimension_semantics = [#tpu.dimension_semantics<parallel>, #tpu.dimension_semantics<arbitrary>], iteration_bounds = array<i64: 1, 1>, scalar_prefetch = 0 : i64, scratch_operands = 1 : i64, tpu.core_type = #tpu.core_type<tc>, window_params = [{pipeline_mode = #tpu.pipeline_mode<synchronous>, transform_indices = @transform_0, window_bounds = array<i64: 8, 32>}, {transform_indices = @transform_1, window_bounds = array<i64: 32, 128>}, {transform_indices = @transform_2, window_bounds = array<i64: 1, 128>}, {transform_indices = @transform_3, window_bounds = array<i64: 1, 128>}, {transform_indices = @transform_4, window_bounds = array<i64: 128, 128>}, {transform_indices = @transform_5, window_bounds = array<i64: 1, 128>}, {transform_indices = @transform_6, window_bounds = array<i64: 8, 128>}]} {
    %c0_i32 = arith.constant 0 : i32
    %0 = arith.cmpi eq, %arg1, %c0_i32 : i32
    %1 = arith.extui %0 : i1 to i32
    %c0_i32_0 = arith.constant 0 : i32
    %2 = arith.cmpi ne, %1, %c0_i32_0 : i32
    scf.if %2 {
      %cst_24 = arith.constant 0.000000e+00 : f32
      %42 = vector.broadcast %cst_24 : f32 to vector<8x128xf32>
      %c0_25 = arith.constant 0 : index
      %c0_26 = arith.constant 0 : index
      %43 = vector.load %arg9[%c0_25, %c0_26] : memref<8x128xf32, #tpu.memory_space<vmem>>, vector<8x128xf32>
      tpu.vector_store %arg9[%c0_25, %c0_26], %42 {strides = array<i32>} : memref<8x128xf32, #tpu.memory_space<vmem>>, vector<8x128xf32>,
    } else {
    }
    %c0 = arith.constant 0 : index
    %c0_1 = arith.constant 0 : index
    %3 = vector.load %arg2[%c0, %c0_1] : memref<8x32xbf16, #tpu.memory_space<vmem>>, vector<8x32xbf16>
    %c0_2 = arith.constant 0 : index
    %c0_3 = arith.constant 0 : index
    %4 = vector.load %arg3[%c0_2, %c0_3] : memref<32x128xbf16, #tpu.memory_space<vmem>>, vector<32x128xbf16>
    %cst = arith.constant dense<0.000000e+00> : vector<8x128xf32>
    %5 = tpu.matmul %3, %4, %cst {dimension_numbers = #tpu.dot_dimension_numbers<[1], [0], [0], [1], [0, 0, 1, 1], [], []>} : vector<8x32xbf16>, vector<32x128xbf16>, vector<8x128xf32> -> vector<8x128xf32>
    %cst_4 = arith.constant dense<0.000000e+00> : vector<128xf32>
    %6 = vector.multi_reduction <add>, %5, %cst_4 [0] : vector<8x128xf32> to vector<128xf32>
    %7 = vector.shape_cast %6 : vector<128xf32> to vector<1x128xf32>
    %cst_5 = arith.constant 1.250000e-01 : f32
    %8 = vector.broadcast %cst_5 : f32 to vector<1x128xf32>
    %9 = arith.mulf %7, %8 : vector<1x128xf32>
    %10 = arith.mulf %5, %5 : vector<8x128xf32>
    %cst_6 = arith.constant dense<0.000000e+00> : vector<128xf32>
    %11 = vector.multi_reduction <add>, %10, %cst_6 [0] : vector<8x128xf32> to vector<128xf32>
    %12 = vector.shape_cast %11 : vector<128xf32> to vector<1x128xf32>
    %cst_7 = arith.constant 1.250000e-01 : f32
    %13 = vector.broadcast %cst_7 : f32 to vector<1x128xf32>
    %14 = arith.mulf %12, %13 : vector<1x128xf32>
    %15 = arith.mulf %9, %9 : vector<1x128xf32>
    %16 = arith.subf %14, %15 : vector<1x128xf32>
    %cst_8 = arith.constant 0.000000e+00 : f32
    %17 = vector.broadcast %cst_8 : f32 to vector<1x128xf32>
    %18 = arith.maximumf %16, %17 : vector<1x128xf32>
    %c0_9 = arith.constant 0 : index
    %c0_10 = arith.constant 0 : index
    %19 = vector.load %arg4[%c0_9, %c0_10] : memref<1x128xf32, #tpu.memory_space<vmem>>, vector<1x128xf32>
    %cst_11 = arith.constant 9.99999974E-6 : f32
    %20 = vector.broadcast %cst_11 : f32 to vector<1x128xf32>
    %21 = arith.addf %18, %20 : vector<1x128xf32>
    %22 = math.rsqrt %21 : vector<1x128xf32>
    %23 = arith.mulf %19, %22 : vector<1x128xf32>
    %c0_12 = arith.constant 0 : index
    %c0_13 = arith.constant 0 : index
    %24 = vector.load %arg5[%c0_12, %c0_13] : memref<1x128xf32, #tpu.memory_space<vmem>>, vector<1x128xf32>
    %25 = arith.mulf %9, %23 : vector<1x128xf32>
    %26 = arith.subf %24, %25 : vector<1x128xf32>
    %27 = vector.broadcast %23 : vector<1x128xf32> to vector<8x128xf32>
    %28 = arith.mulf %5, %27 : vector<8x128xf32>
    %29 = vector.broadcast %26 : vector<1x128xf32> to vector<8x128xf32>
    %30 = arith.addf %28, %29 : vector<8x128xf32>
    %cst_14 = arith.constant 0.000000e+00 : f32
    %31 = vector.broadcast %cst_14 : f32 to vector<8x128xf32>
    %32 = arith.maximumf %30, %31 : vector<8x128xf32>
    %c0_15 = arith.constant 0 : index
    %c0_16 = arith.constant 0 : index
    %33 = vector.load %arg9[%c0_15, %c0_16] : memref<8x128xf32, #tpu.memory_space<vmem>>, vector<8x128xf32>
    %34 = arith.truncf %32 : vector<8x128xf32> to vector<8x128xbf16>
    %c0_17 = arith.constant 0 : index
    %c0_18 = arith.constant 0 : index
    %35 = vector.load %arg6[%c0_17, %c0_18] : memref<128x128xbf16, #tpu.memory_space<vmem>>, vector<128x128xbf16>
    %cst_19 = arith.constant dense<0.000000e+00> : vector<8x128xf32>
    %36 = tpu.matmul %34, %35, %cst_19 {dimension_numbers = #tpu.dot_dimension_numbers<[1], [0], [0], [1], [0, 0, 1, 1], [], []>} : vector<8x128xbf16>, vector<128x128xbf16>, vector<8x128xf32> -> vector<8x128xf32>
    %37 = arith.addf %33, %36 : vector<8x128xf32>
    %c0_20 = arith.constant 0 : index
    %c0_21 = arith.constant 0 : index
    %38 = vector.load %arg9[%c0_20, %c0_21] : memref<8x128xf32, #tpu.memory_space<vmem>>, vector<8x128xf32>
    tpu.vector_store %arg9[%c0_20, %c0_21], %37 {strides = array<i32>} : memref<8x128xf32, #tpu.memory_space<vmem>>, vector<8x128xf32>,
    %c0_i32_22 = arith.constant 0 : i32
    %39 = arith.cmpi eq, %arg1, %c0_i32_22 : i32
    %40 = arith.extui %39 : i1 to i32
    %c0_i32_23 = arith.constant 0 : i32
    %41 = arith.cmpi ne, %40, %c0_i32_23 : i32
    scf.if %41 {
      %c0_24 = arith.constant 0 : index
      %c0_25 = arith.constant 0 : index
      %42 = vector.load %arg9[%c0_24, %c0_25] : memref<8x128xf32, #tpu.memory_space<vmem>>, vector<8x128xf32>
      %c0_26 = arith.constant 0 : index
      %c0_27 = arith.constant 0 : index
      %43 = vector.load %arg7[%c0_26, %c0_27] : memref<1x128xf32, #tpu.memory_space<vmem>>, vector<1x128xf32>
      %44 = vector.broadcast %43 : vector<1x128xf32> to vector<8x128xf32>
      %45 = arith.addf %42, %44 : vector<8x128xf32>
      %c0_28 = arith.constant 0 : index
      %c0_29 = arith.constant 0 : index
      %46 = vector.load %arg8[%c0_28, %c0_29] : memref<8x128xf32, #tpu.memory_space<vmem>>, vector<8x128xf32>
      tpu.vector_store %arg8[%c0_28, %c0_29], %45 {strides = array<i32>} : memref<8x128xf32, #tpu.memory_space<vmem>>, vector<8x128xf32>,
    } else {
    }
    return
  }
  func.func @transform_0(%arg0: i32, %arg1: i32) -> (i32, i32) {
    %c0_i32 = arith.constant 0 : i32
    %c0_i32_0 = arith.constant 0 : i32
    %c0_i32_1 = arith.constant 0 : i32
    return %c0_i32, %c0_i32_0 : i32, i32
  }
  func.func @transform_1(%arg0: i32, %arg1: i32) -> (i32, i32) {
    %c0_i32 = arith.constant 0 : i32
    %c0_i32_0 = arith.constant 0 : i32
    return %c0_i32, %arg1 : i32, i32
  }
  func.func @transform_2(%arg0: i32, %arg1: i32) -> (i32, i32) {
    %c0_i32 = arith.constant 0 : i32
    %c0_i32_0 = arith.constant 0 : i32
    return %c0_i32, %arg1 : i32, i32
  }
  func.func @transform_3(%arg0: i32, %arg1: i32) -> (i32, i32) {
    %c0_i32 = arith.constant 0 : i32
    %c0_i32_0 = arith.constant 0 : i32
    return %c0_i32, %arg1 : i32, i32
  }
  func.func @transform_4(%arg0: i32, %arg1: i32) -> (i32, i32) {
    %c0_i32 = arith.constant 0 : i32
    return %arg1, %arg0 : i32, i32
  }
  func.func @transform_5(%arg0: i32, %arg1: i32) -> (i32, i32) {
    %c0_i32 = arith.constant 0 : i32
    %c0_i32_0 = arith.constant 0 : i32
    return %c0_i32, %arg0 : i32, i32
  }
  func.func @transform_6(%arg0: i32, %arg1: i32) -> (i32, i32) {
    %c0_i32 = arith.constant 0 : i32
    %c0_i32_0 = arith.constant 0 : i32
    return %c0_i32, %arg0 : i32, i32
  }
}

</mosaic_0001>

<bundles_post_ra>
// kernel: tpu_custom_call.1
= control target key start
LH: loop header
LB: loop body
LE: loop exit
PB: predicated region body
PF: predicated region fallthrough
CT: control target
= control target key end

     0   :  { %11 = vsyncpa [#allocation4], 0  ;;  %s579_s0 = inlined_call_operand.hbm [shape: bf16[8,32], index: 0, kind: input, shape index: {}]   ;;  %s580_s1 = inlined_call_operand.hbm [shape: bf16[32,128], index: 1, kind: input, shape index: {}]   ;;  %s581_s2 = inlined_call_operand.vmem [shape: f32[1,128], index: 2, kind: input, shape index: {}]   ;;  %s582_s3 = inlined_call_operand.vmem [shape: f32[1,128], index: 3, kind: input, shape index: {}]   ;;  %s583_s4 = inlined_call_operand.hbm [shape: bf16[128,128], index: 4, kind: input, shape index: {}]   ;;  %s584_s5 = inlined_call_operand.vmem [shape: f32[1,128], index: 5, kind: input, shape index: {}]   ;;  %s585_s6 = inlined_call_operand.hbm [shape: f32[8,128], index: 6, kind: output, shape index: {}]  }
   0x1   :  { %12 = vsyncpa [#allocation7], 0 }
   0x2   :  { %13 = vsyncpa [#allocation5], 0  ;;  %s473_s21 = smov [#allocation6]   ;;  %s379_s25 = scalar_lea.hbm %s580_s1, 256 }
   0x3   :  { %s29_s22 = sshll.u32 %s473_s21, 4  ;;  %p380_p0 = scmp.ne.s32.totalorder %s580_s1, %s379_s25  ;;  %s30_s22 = int_to_ptr.vmem [resolvable:$true] %s29_s22 }
   0x4   :  { %p383_p1 = scmp.lt.u32.totalorder %s379_s25, %s580_s1 }
   0x6   :  { %p385_p2 = pnand %p383_p1, %p380_p0 }
   0x8   :  { %388 = shalt.err (!%p385_p2)
}
   0x9   :  { %s389_s30 = scalar_lea.vmem %s30_s22, 256  ;;  %p394_p4 = scmp.lt.s32.totalorder %s30_s22, %s30_s22 }
   0xa   :  { %p390_p3 = scmp.ne.s32.totalorder %s30_s22, %s389_s30  ;;  %p395_p5 = scmp.lt.s32.totalorder %s389_s30, %s389_s30 }
   0xc   :  { %p396_p6 = por %p395_p5, %p394_p4 }
   0xe   :  { %p397_p7 = pnand %p396_p6, %p390_p3 }
  0x10   :  { %400 = shalt.err (!%p397_p7)
}
  0x11   :  { %s474_s7 = smov 64   ;;  %s475_s8 = smov 4  }
  0x12   :  { %35 = dma.hbm_to_vmem [thread:$0]  %s580_s1, 256, %s30_s22, [#allocation7], %s474_s7, %s474_s7, %s475_s8  }
  0x13   :  { %s476_s11 = smov [#allocation3]   ;;  %s477_s13 = smov [#allocation8]  }
  0x14   :  { %s20_s12 = sshll.u32 %s476_s11, 4  ;;  %s45_s14 = sshll.u32 %s477_s13, 4  ;;  %s21_s12 = int_to_ptr.vmem [resolvable:$true] %s20_s12  ;;  %s46_s14 = int_to_ptr.vmem [resolvable:$true] %s45_s14 }
  0x15   :  { %s401_s17 = scalar_lea.hbm %s579_s0, 64 }
  0x16   :  { %p402_p8 = scmp.ne.s32.totalorder %s579_s0, %s401_s17  ;;  %p405_p9 = scmp.lt.u32.totalorder %s401_s17, %s579_s0 }
  0x18   :  { %p407_p10 = pnand %p405_p9, %p402_p8 }
  0x1a   :  { %410 = shalt.err (!%p407_p10)
}
  0x1b   :  { %s411_s1 = scalar_lea.vmem %s21_s12, 64  ;;  %p416_p12 = scmp.lt.s32.totalorder %s21_s12, %s21_s12 }
  0x1c   :  { %p412_p11 = scmp.ne.s32.totalorder %s21_s12, %s411_s1  ;;  %p417_p13 = scmp.lt.s32.totalorder %s411_s1, %s411_s1 }
  0x1e   :  { %p418_p0 = por %p417_p13, %p416_p12 }
  0x20   :  { %p419_p1 = pnand %p418_p0, %p412_p11 }
  0x22   :  { %422 = shalt.err (!%p419_p1)
}
  0x23   :  { %23 = dma.hbm_to_vmem [thread:$0]  %s579_s0, 64, %s21_s12, [#allocation4]  }
  0x24   :  { %s423_s26 = scalar_lea.hbm %s583_s4, 1024 }
  0x25   :  { %p424_p2 = scmp.ne.s32.totalorder %s583_s4, %s423_s26  ;;  %p427_p3 = scmp.lt.u32.totalorder %s423_s26, %s583_s4 }
  0x27   :  { %p429_p4 = pnand %p427_p3, %p424_p2 }
  0x29   :  { %432 = shalt.err (!%p429_p4)
}
  0x2a   :  { %s433_s9 = scalar_lea.vmem %s46_s14, 1024  ;;  %p438_p6 = scmp.lt.s32.totalorder %s46_s14, %s46_s14 }
  0x2b   :  { %p434_p5 = scmp.ne.s32.totalorder %s46_s14, %s433_s9  ;;  %p439_p7 = scmp.lt.s32.totalorder %s433_s9, %s433_s9 }
  0x2d   :  { %p440_p8 = por %p439_p7, %p438_p6 }
  0x2f   :  { %p441_p9 = pnand %p440_p8, %p434_p5 }
  0x31   :  { %444 = shalt.err (!%p441_p9)
}
  0x32   :  { %51 = dma.hbm_to_vmem [thread:$0]  %s583_s4, 1024, %s46_s14, [#allocation7], %s474_s7, %s474_s7, %s475_s8  }
  0x33   :  { %467 = dma.done.wait [#allocation4], 64  }
  0x34   :  { %468 = vsyncadd [#allocation4], 4294967232 }
  0x35   :  { %469 = dma.done.wait [#allocation7], 1280  }
  0x36   :  { %470 = vsyncadd [#allocation7], 4294966016  ;;  %v478_v0 = vmov 0.0   ;;  %vm479_vm0 = vmmov 0   ;;  %v367_v1 = vld [vmem:[#allocation6] sm:$0xff]   ;;  %v368_v2 = vld [vmem:[#allocation6 + $0x8] sm:$0xff]   ;;  %v156_v35 = vlaneseq }
  0x37   :  { %331 = vmatprep.subr.bf16.mxu0 %v478_v0  ;;  %335 = vmatprep.mubr.msk.bf16.mxu0 %vm479_vm0, %v478_v0  ;;  %vm86_vm1 = vcmask 261120   ;;  %v69_v3 = vld [vmem:[#allocation3] sm:$0xf]  ;;  %v369_v4 = vld [vmem:[#allocation8] sm:$0xff]   ;;  %v371_v6 = vld [vmem:[#allocation8 + $0x10] sm:$0xff]  }
  0x38   :  { %339 = vmatprep.subr.bf16.mxu1 %v478_v0  ;;  %355 = vmatprep.mubr.msk.bf16.mxu1 %vm479_vm0, %v478_v0  ;;  %v370_v5 = vld [vmem:[#allocation8 + $0x8] sm:$0xff]   ;;  %v372_v7 = vld [vmem:[#allocation8 + $0x18] sm:$0xff]   ;;  %v373_v8 = vld [vmem:[#allocation8 + $0x20] sm:$0xff]   ;;  %v157_v36 = vshrl.u32 %v156_v35, 7 }
  0x39   :  { %332 = vmatpush3.bf16.msra.mxu0 %v367_v1  ;;  %340 = vmatpush3.bf16.msra.mxu1 %v369_v4  ;;  %v374_v9 = vld [vmem:[#allocation8 + $0x28] sm:$0xff]   ;;  %v375_v10 = vld [vmem:[#allocation8 + $0x30] sm:$0xff]   ;;  %v376_v11 = vld [vmem:[#allocation8 + $0x38] sm:$0xff]  }
  0x3a   :  { %333 = vmatprep.subr.bf16.mxu0 %v478_v0  ;;  %341 = vmatprep.subr.bf16.mxu1 %v478_v0  ;;  %v148_v37 = vld [vmem:[%s581_s2] sm:$0x1]  ;;  %v158_v38 = vsub.s32 0, %v157_v36  ;;  %s480_s2 = smov [#allocation9]  }
  0x3b   :  { %v152_v41 = vld [vmem:[%s582_s3] sm:$0x1]  ;;  %s297_s14 = sshll.u32 %s480_s2, 4  ;;  %s298_s14 = int_to_ptr.vmem [resolvable:$true] %s297_s14 }
  0x3c   :  { %v318_v50 = vld [vmem:[%s584_s5] ss:$0 sm:$0xff]  ;;  %s445_s3 = scalar_lea.vmem %s298_s14, 128  ;;  %p450_p11 = scmp.lt.s32.totalorder %s298_s14, %s298_s14 }
  0x3d   :  { %334 = vmatpush3.bf16.msra.mxu0 %v368_v2  ;;  %342 = vmatpush3.bf16.msra.mxu1 %v370_v5  ;;  %p446_p10 = scmp.ne.s32.totalorder %s298_s14, %s445_s3  ;;  %p451_p12 = scmp.lt.s32.totalorder %s445_s3, %s445_s3 }
  0x3e   :  { %343 = vmatprep.subr.bf16.mxu1 %v478_v0 }
  0x3f   :  { %p452_p13 = por %p451_p12, %p450_p11 }
  0x40   :  { %336 = vmatmul.mubr.msk.bf16.vlgmr.msra.gmra.mrb[0].mxu0 %vm86_vm1, %v69_v3 }
  0x41   :  { %344 = vmatpush3.bf16.msra.mxu1 %v371_v6  ;;  %p453_p0 = pnand %p452_p13, %p446_p10 }
  0x42   :  { %345 = vmatprep.subr.bf16.mxu1 %v478_v0 }
  0x45   :  { %346 = vmatpush3.bf16.msra.mxu1 %v372_v7 }
  0x46   :  { %347 = vmatprep.subr.bf16.mxu1 %v478_v0 }
  0x49   :  { %348 = vmatpush3.bf16.msra.mxu1 %v373_v8 }
  0x4a   :  { %349 = vmatprep.subr.bf16.mxu1 %v478_v0 }
  0x4d   :  { %350 = vmatpush3.bf16.msra.mxu1 %v374_v9 }
  0x4e   :  { %351 = vmatprep.subr.bf16.mxu1 %v478_v0 }
  0x51   :  { %352 = vmatpush3.bf16.msra.mxu1 %v375_v10 }
  0x52   :  { %353 = vmatprep.subr.bf16.mxu1 %v478_v0 }
  0x55   :  { %354 = vmatpush3.bf16.msra.mxu1 %v376_v11 }
 0x113   :  { %v124_v12 = vpop.f32.mrb[0].mxu0 }
 0x114   :  { %v130_v13 = vrot.slane %v124_v12, 4  ;;  %v137_v14 = vmul.f32 %v124_v12, %v124_v12  ;;  %v337_v15 = vpop.f32.mrb[1].mxu0 }
 0x115   :  { %v127_v16 = vpop.f32.mrb[2].mxu0 }
 0x116   :  { %v131_v17 = vadd.f32 %v130_v13, %v124_v12  ;;  %v138_v18 = vrot.slane %v137_v14, 4  ;;  %v338_v19 = vpop.f32.mrb[3].mxu0 }
 0x118   :  { %v132_v20 = vrot.slane %v131_v17, 2  ;;  %v139_v21 = vadd.f32 %v138_v18, %v137_v14 }
 0x11a   :  { %v133_v22 = vadd.f32 %v132_v20, %v131_v17  ;;  %v140_v23 = vrot.slane %v139_v21, 2 }
 0x11c   :  { %v134_v24 = vrot.slane %v133_v22, 1  ;;  %v141_v25 = vadd.f32 %v140_v23, %v139_v21 }
 0x11e   :  { %v135_v26 = vadd.f32 %v134_v24, %v133_v22  ;;  %v142_v27 = vrot.slane %v141_v25, 1 }
 0x120   :  { %v136_v28 = vmul.f32 0.125, %v135_v26  ;;  %v143_v29 = vadd.f32 %v142_v27, %v141_v25 }
 0x122   :  { %v144_v30 = vmul.f32 0.125, %v143_v29  ;;  %v145_v31 = vmul.f32 %v136_v28, %v136_v28 }
 0x124   :  { %v146_v32 = vsub.f32 %v144_v30, %v145_v31 }
 0x126   :  { %v147_v33 = vmax.f32 %v146_v32, 0.0 }
 0x128   :  { %v149_v34 = vadd.f32 1e-05, %v147_v33 }
 0x12a   :  { %377 = vrsqrt.f32 %v149_v34 }
 0x134   :  { %v378_v39 = vpop.eup %377 }
 0x135   :  { %v151_v40 = vmul.f32 %v378_v39, %v148_v37 }
 0x137   :  { %v159_v42 = vrot.slane %v151_v40, %v158_v38  ;;  %v153_v43 = vmul.f32 %v151_v40, %v136_v28 }
 0x139   :  { %v154_v44 = vsub.f32 %v152_v41, %v153_v43  ;;  %v161_v45 = vmul.f32 %v159_v42, %v124_v12 }
 0x13b   :  { %v166_v46 = vrot.slane %v154_v44, %v158_v38 }
 0x13d   :  { %v168_v47 = vadd.f32 %v166_v46, %v161_v45 }
 0x13f   :  { %v169_v48 = vmax.f32 %v168_v47, 0.0 }
 0x141   :  { %v171_v49 = vpack.c.bf16 %v169_v48, %v169_v48 }
 0x143   :  { %356 = vmatmul.mubr.bf16.vlgmr.msra.gmra.mrb[0].mxu1 %v171_v49 }
 0x216   :  { %v270_v51 = vpop.f32.mrb[0].mxu1 }
 0x217   :  { %v289_v52 = vadd.f32 %v318_v50, %v270_v51  ;;  %v357_v53 = vpop.f32.mrb[1].mxu1 }
 0x218   :  { %v273_v54 = vpop.f32.mrb[2].mxu1 }
 0x219   :  { %290 = vst [vmem:[#allocation9] sm:$0xff] %v289_v52  ;;  %v358_v55 = vpop.f32.mrb[3].mxu1 }
 0x21a   :  { %456 = shalt.err (!%p453_p0)
}
 0x21b   :  { %s457_s5 = scalar_lea.hbm %s585_s6, 128 }
 0x21c   :  { %p458_p1 = scmp.ne.s32.totalorder %s585_s6, %s457_s5  ;;  %p461_p2 = scmp.lt.u32.totalorder %s457_s5, %s585_s6 }
 0x21e   :  { %p463_p3 = pnand %p461_p2, %p458_p1 }
 0x220   :  { %466 = shalt.err (!%p463_p3)
}
 0x221   :  { %300 = dma.vmem_to_hbm [thread:$0]  %s298_s14, 128, %s585_s6, [#allocation5]  }
 0x222   :  { %471 = dma.done.wait [#allocation5], 128  }
 0x223   :  { %472 = vsyncadd [#allocation5], 4294967168 }
 0x224   :  { %304 = vsyncpa [#allocation4], 1 }
 0x225   :  { %305 = vsyncpa [#allocation7], 1 }
 0x226   :  { %306 = vsyncpa [#allocation5], 1 }

</bundles_post_ra>
